<compile_context>
chip_gen: v5e
topology: v5e:2x2
jax: 0.10.0
libtpu: 0.0.40
codegen_flags: <defaults>
</compile_context>

<pallas_src>
import functools

import jax
import jax.numpy as jnp
from jax.experimental import pallas as pl
from jax.experimental.pallas import tpu as pltpu


def _round_up(x, m):
    return (x + m - 1) // m * m


def _largest_divisor_tile(total, target, unit=128):
    """Largest multiple of `unit` that divides `total` and is <= max(target, unit)."""
    n = total // unit
    target_units = max(1, target // unit)
    best = 1
    for d in range(1, n + 1):
        if n % d == 0 and d <= target_units:
            best = d
    return best * unit


def _vmem_capacity_bytes():
    try:
        cap = getattr(pltpu.get_tpu_info(), "vmem_capacity_bytes", None)
        if cap:
            return int(cap)
    except Exception:
        pass
    return 64 << 20  # conservative: v7x per-TC VMEM


def _gate_act(g, gate_type, gelu_approx=False):
    if gate_type == "glu":
        return jax.nn.sigmoid(g)
    if gate_type == "swiglu":
        return g * jax.nn.sigmoid(g)          # SiLU
    if gate_type == "geglu":
        return jax.nn.gelu(g, approximate=gelu_approx)   # exact erf matches torch default
    raise ValueError(f"Unsupported gate_type: {gate_type}")


def _vmem_need(tm_c, tf_c, d_model_p, in_b, out_b, w_b, with_acc):
    n = 2 * tm_c * d_model_p * in_b                # x tile (double-buffered)
    n += 2 * tm_c * d_model_p * out_b              # output tile
    n += 2 * 3 * d_model_p * tf_c * w_b            # w_v, w_g, w_o tiles (double-buffered)
    n += 2 * 8 * (2 * tf_c + d_model_p) * 4        # f32 biases (sublane-padded)
    if with_acc:
        n += tm_c * d_model_p * 4                  # f32 accumulator scratch
    return n


def _select_tiles(M, d_model_p, d_ff_p, in_b, out_b, w_b, tm_req, tf_req, budget):
    sub = max(8, 32 // in_b)                       # 8 for f32, 16 for bf16, 32 for int8/fp8
    tm_align = 128 if M >= 128 else sub

    # Descending, MXU-friendly token-tile candidates.
    tm_top = max(tm_align, _round_up(min(tm_req, max(M, sub)), tm_align))
    tm_cands = []
    t = tm_top
    while True:
        tm_cands.append(t)
        if t <= tm_align:
            break
        nt = max(tm_align, _round_up(t // 2, tm_align))
        if nt == t:
            break
        t = nt

    # 1) Prefer fully VMEM-resident weights (single d_ff tile, fetched once).
    for tm_c in tm_cands:
        if tm_c < min(128, tm_cands[0]):
            break
        if _vmem_need(tm_c, d_ff_p, d_model_p, in_b, out_b, w_b, False) <= budget:
            return tm_c, d_ff_p

    # 2) Stream d_ff (innermost reduction axis); keep tm as large as possible.
    tf_top = _largest_divisor_tile(d_ff_p, max(tf_req, 128))
    for tm_c in tm_cands:
        tf_c = tf_top
        while True:
            if _vmem_need(tm_c, tf_c, d_model_p, in_b, out_b, w_b, True) <= budget:
                return tm_c, tf_c
            if tf_c <= 128:
                break
            tf_c = _largest_divisor_tile(d_ff_p, tf_c - 128)

    # 3) Last resort: smallest tiles.
    return tm_cands[-1], 128


def _gated_ffn_kernel(x_ref, wv_ref, bv_ref, wg_ref, bg_ref, wo_ref, bo_ref,
                      o_ref, acc_ref=None, *, gate_type, gelu_approx):
    x = x_ref[...]
    v = jnp.dot(x, wv_ref[...], preferred_element_type=jnp.float32) + bv_ref[...]
    g = jnp.dot(x, wg_ref[...], preferred_element_type=jnp.float32) + bg_ref[...]
    g = _gate_act(g, gate_type, gelu_approx)

    # TODO(synk): nn.Dropout is identity in eval mode; no RNG-based dropout applied.
    h = (v * g).astype(wo_ref.dtype)   # downcast before down-projection (f32 accum kept)
    partial = jnp.dot(h, wo_ref[...], preferred_element_type=jnp.float32)

    if acc_ref is None:
        # Weight-resident path: single d_ff tile, no accumulator round-trip.
        o_ref[...] = (partial + bo_ref[...]).astype(o_ref.dtype)
    else:
        j = pl.program_id(1)

        @pl.when(j == 0)
        def _():
            acc_ref[...] = partial             # direct store: no zero-init + RMW

        @pl.when(j > 0)
        def _():
            acc_ref[...] += partial

        @pl.when(j == pl.num_programs(1) - 1)
        def _():
            o_ref[...] = (acc_ref[...] + bo_ref[...]).astype(o_ref.dtype)


def prepare_params(params, *, compute_dtype=None):
    """Pad (and optionally cast) weights/biases once; reuse across calls."""
    wv, bv, wg, bg, wo, bo = params
    d_model, d_ff = wv.shape
    d_model_p = _round_up(d_model, 128)
    d_ff_p = _round_up(d_ff, 128)
    wdt = compute_dtype if compute_dtype is not None else wv.dtype

    def pad2(a, rows, cols, dt):
        a = a.astype(dt)
        if a.shape != (rows, cols):
            a = jnp.pad(a, ((0, rows - a.shape[0]), (0, cols - a.shape[1])))
        return a

    return (pad2(wv, d_model_p, d_ff_p, wdt),
            pad2(bv.reshape(1, -1), 1, d_ff_p, jnp.float32),
            pad2(wg, d_model_p, d_ff_p, wdt),
            pad2(bg.reshape(1, -1), 1, d_ff_p, jnp.float32),
            pad2(wo, d_ff_p, d_model_p, wdt),
            pad2(bo.reshape(1, -1), 1, d_model_p, jnp.float32))


def gated_feed_forward(x, params, *, gate_type="swiglu", tm=512, tf=512,
                       compute_dtype=None, gelu_approximate=False,
                       params_prepared=False):
    """x: [B, S, d_model] -> [B, S, d_model]."""
    B, S, d_model = x.shape
    out_dtype = x.dtype

    if params_prepared:
        wv_p, bv_p, wg_p, bg_p, wo_p, bo_p = params
    else:
        wv_p, bv_p, wg_p, bg_p, wo_p, bo_p = prepare_params(
            params, compute_dtype=compute_dtype)
    d_model_p, d_ff_p = wv_p.shape

    xc = x.astype(compute_dtype) if compute_dtype is not None else x
    M = B * S
    x2d = xc.reshape(M, d_model)

    in_b = jnp.dtype(xc.dtype).itemsize
    out_b = jnp.dtype(out_dtype).itemsize
    w_b = jnp.dtype(wv_p.dtype).itemsize

    vmem_cap = _vmem_capacity_bytes()
    budget = int(vmem_cap * 0.8)

    tm_eff, tf_eff = _select_tiles(M, d_model_p, d_ff_p, in_b, out_b, w_b,
                                   tm, tf, budget)

    # Megacore: ensure the "parallel" M axis has >= 2 tiles when possible (v7x 2 TCs).
    sub = max(8, 32 // in_b)
    M_p = _round_up(M, tm_eff)
    if M_p // tm_eff == 1 and tm_eff >= 2 * sub:
        half = max(sub, _round_up(tm_eff // 2, sub))
        if half < tm_eff:
            tm_eff = half
            M_p = _round_up(M, tm_eff)

    grid = (M_p // tm_eff, d_ff_p // tf_eff)
    single_j = grid[1] == 1

    x_p = x2d
    if (M_p, d_model_p) != (M, d_model):
        x_p = jnp.pad(x2d, ((0, M_p - M), (0, d_model_p - d_model)))

    # VMEM limit clamped to physical capacity (v7x: 64 MiB per TC).
    need = _vmem_need(tm_eff, tf_eff, d_model_p, in_b, out_b, w_b, not single_j)
    vmem_limit = min(vmem_cap, max(32 << 20, int(need * 1.25) + (2 << 20)))

    weight_bytes = ((wv_p.size + wg_p.size + wo_p.size) * w_b
                    + (bv_p.size + bg_p.size + bo_p.size) * 4)
    weight_passes = 1 if single_j else grid[0]
    cost = pl.CostEstimate(
        flops=6 * M_p * d_model_p * d_ff_p,
        transcendentals=M_p * d_ff_p,
        bytes_accessed=M_p * d_model_p * (in_b + out_b) + weight_bytes * weight_passes,
    )

    kernel = functools.partial(_gated_ffn_kernel, gate_type=gate_type,
                               gelu_approx=gelu_approximate)

    out_p = pl.pallas_call(
        kernel,
        out_shape=jax.ShapeDtypeStruct((M_p, d_model_p), out_dtype),
        grid_spec=pltpu.PrefetchScalarGridSpec(
            num_scalar_prefetch=0,
            grid=grid,
            in_specs=[
                pl.BlockSpec((tm_eff, d_model_p), lambda i, j: (i, 0)),   # x
                pl.BlockSpec((d_model_p, tf_eff), lambda i, j: (0, j)),   # w_v
                pl.BlockSpec((1, tf_eff),         lambda i, j: (0, j)),   # b_v
                pl.BlockSpec((d_model_p, tf_eff), lambda i, j: (0, j)),   # w_g
                pl.BlockSpec((1, tf_eff),         lambda i, j: (0, j)),   # b_g
                pl.BlockSpec((tf_eff, d_model_p), lambda i, j: (j, 0)),   # w_o
                pl.BlockSpec((1, d_model_p),      lambda i, j: (0, 0)),   # b_o
            ],
            out_specs=pl.BlockSpec((tm_eff, d_model_p), lambda i, j: (i, 0)),
            scratch_shapes=([] if single_j
                            else [pltpu.VMEM((tm_eff, d_model_p), jnp.float32)]),
        ),
        compiler_params=pltpu.CompilerParams(
            dimension_semantics=("parallel", "arbitrary"),
            vmem_limit_bytes=vmem_limit,
        ),
        cost_estimate=cost,
    )(x_p, wv_p, bv_p, wg_p, bg_p, wo_p, bo_p)

    return out_p[:M, :d_model].reshape(B, S, d_model)


def init_params(key, d_model, d_ff, dtype=jnp.float32):
    """Deterministic init mimicking nn.Linear (uniform +-1/sqrt(fan_in))."""
    ks = jax.random.split(key, 6)

    def lin(kw, kb, fan_in, fan_out):
        bound = 1.0 / (fan_in ** 0.5)
        w = jax.random.uniform(kw, (fan_in, fan_out), dtype, -bound, bound)
        b = jax.random.uniform(kb, (1, fan_out), dtype, -bound, bound)
        return w, b

    wv, bv = lin(ks[0], ks[1], d_model, d_ff)
    wg, bg = lin(ks[2], ks[3], d_model, d_ff)
    wo, bo = lin(ks[4], ks[5], d_ff, d_model)
    return wv, bv, wg, bg, wo, bo


def _reference(x, params, gate_type):
    wv, bv, wg, bg, wo, bo = params
    v = x @ wv + bv.reshape(-1)
    g = _gate_act(x @ wg + bg.reshape(-1), gate_type)
    return (v * g) @ wo + bo.reshape(-1)


if __name__ == "__main__":
    B, S, d_model, d_ff = 2, 8, 32, 64

    key = jax.random.PRNGKey(0)
    kx, kp = jax.random.split(key)
    x = jax.random.normal(kx, (B, S, d_model), jnp.float32)
    params = init_params(kp, d_model, d_ff, jnp.float32)

    # f32 path, all three gate variants, tight tolerance.
    for gate_type in ("swiglu", "glu", "geglu"):
        out = jax.block_until_ready(
            gated_feed_forward(x, params, gate_type=gate_type))
        ref = _reference(x, params, gate_type)
        assert out.shape == (B, S, d_model)
        assert jnp.allclose(out, ref, atol=1e-4, rtol=1e-4), f"{gate_type} mismatch"

    ref_swiglu = _reference(x, params, "swiglu")

    # Hoisted weight padding: prepare once, reuse across calls.
    prepped = prepare_params(params)
    out_prep = jax.block_until_ready(
        gated_feed_forward(x, prepped, gate_type="swiglu", params_prepared=True))
    assert jnp.allclose(out_prep, ref_swiglu, atol=1e-4, rtol=1e-4)

    # bf16 parameter path (bf16 MXU inputs, f32 accumulation).
    x16 = x.astype(jnp.bfloat16)
    p16 = tuple(p.astype(jnp.bfloat16) for p in params)
    out16 = jax.block_until_ready(gated_feed_forward(x16, p16, gate_type="swiglu"))
    assert float(jnp.max(jnp.abs(out16.astype(jnp.float32) - ref_swiglu))) < 0.25

    # bf16 compute fast path for f32 params/activations (output stays f32).
    outc = jax.block_until_ready(
        gated_feed_forward(x, params, gate_type="swiglu", compute_dtype=jnp.bfloat16))
    assert outc.dtype == x.dtype
    assert float(jnp.max(jnp.abs(outc - ref_swiglu))) < 0.25

    print("KERNEL_OK")
</pallas_src>

<mosaic_0001>
module attributes {stable_mosaic.version = 11 : i64} {
  func.func @_gated_ffn_kernel(%arg0: i32, %arg1: i32, %arg2: memref<8x128xf32, #tpu.memory_space<vmem>>, %arg3: memref<128x128xf32, #tpu.memory_space<vmem>>, %arg4: memref<1x128xf32, #tpu.memory_space<vmem>>, %arg5: memref<128x128xf32, #tpu.memory_space<vmem>>, %arg6: memref<1x128xf32, #tpu.memory_space<vmem>>, %arg7: memref<128x128xf32, #tpu.memory_space<vmem>>, %arg8: memref<1x128xf32, #tpu.memory_space<vmem>>, %arg9: memref<8x128xf32, #tpu.memory_space<vmem>>) attributes {dimension_semantics = [#tpu.dimension_semantics<parallel>, #tpu.dimension_semantics<arbitrary>], iteration_bounds = array<i64: 2, 1>, scalar_prefetch = 0 : i64, scratch_operands = 0 : i64, tpu.core_type = #tpu.core_type<tc>, window_params = [{transform_indices = @transform_0, window_bounds = array<i64: 8, 128>}, {transform_indices = @transform_1, window_bounds = array<i64: 128, 128>}, {transform_indices = @transform_2, window_bounds = array<i64: 1, 128>}, {transform_indices = @transform_3, window_bounds = array<i64: 128, 128>}, {transform_indices = @transform_4, window_bounds = array<i64: 1, 128>}, {transform_indices = @transform_5, window_bounds = array<i64: 128, 128>}, {pipeline_mode = #tpu.pipeline_mode<synchronous>, transform_indices = @transform_6, window_bounds = array<i64: 1, 128>}, {transform_indices = @transform_7, window_bounds = array<i64: 8, 128>}]} {
    %c0 = arith.constant 0 : index
    %c0_0 = arith.constant 0 : index
    %0 = vector.load %arg2[%c0, %c0_0] : memref<8x128xf32, #tpu.memory_space<vmem>>, vector<8x128xf32>
    %c0_1 = arith.constant 0 : index
    %c0_2 = arith.constant 0 : index
    %1 = vector.load %arg3[%c0_1, %c0_2] : memref<128x128xf32, #tpu.memory_space<vmem>>, vector<128x128xf32>
    %cst = arith.constant dense<0.000000e+00> : vector<8x128xf32>
    %2 = tpu.matmul %0, %1, %cst {dimension_numbers = #tpu.dot_dimension_numbers<[1], [0], [0], [1], [0, 0, 1, 1], [], []>} : vector<8x128xf32>, vector<128x128xf32>, vector<8x128xf32> -> vector<8x128xf32>
    %c0_3 = arith.constant 0 : index
    %c0_4 = arith.constant 0 : index
    %3 = vector.load %arg4[%c0_3, %c0_4] : memref<1x128xf32, #tpu.memory_space<vmem>>, vector<1x128xf32>
    %4 = vector.broadcast %3 : vector<1x128xf32> to vector<8x128xf32>
    %5 = arith.addf %2, %4 : vector<8x128xf32>
    %c0_5 = arith.constant 0 : index
    %c0_6 = arith.constant 0 : index
    %6 = vector.load %arg5[%c0_5, %c0_6] : memref<128x128xf32, #tpu.memory_space<vmem>>, vector<128x128xf32>
    %cst_7 = arith.constant dense<0.000000e+00> : vector<8x128xf32>
    %7 = tpu.matmul %0, %6, %cst_7 {dimension_numbers = #tpu.dot_dimension_numbers<[1], [0], [0], [1], [0, 0, 1, 1], [], []>} : vector<8x128xf32>, vector<128x128xf32>, vector<8x128xf32> -> vector<8x128xf32>
    %c0_8 = arith.constant 0 : index
    %c0_9 = arith.constant 0 : index
    %8 = vector.load %arg6[%c0_8, %c0_9] : memref<1x128xf32, #tpu.memory_space<vmem>>, vector<1x128xf32>
    %9 = vector.broadcast %8 : vector<1x128xf32> to vector<8x128xf32>
    %10 = arith.addf %7, %9 : vector<8x128xf32>
    %11 = arith.negf %10 : vector<8x128xf32>
    %12 = math.exp %11 : vector<8x128xf32>
    %cst_10 = arith.constant 1.000000e+00 : f32
    %13 = vector.broadcast %cst_10 : f32 to vector<8x128xf32>
    %14 = arith.addf %13, %12 : vector<8x128xf32>
    %15 = arith.divf %13, %14 : vector<8x128xf32>
    %16 = arith.mulf %10, %15 : vector<8x128xf32>
    %17 = arith.mulf %5, %16 : vector<8x128xf32>
    %c0_11 = arith.constant 0 : index
    %c0_12 = arith.constant 0 : index
    %18 = vector.load %arg7[%c0_11, %c0_12] : memref<128x128xf32, #tpu.memory_space<vmem>>, vector<128x128xf32>
    %cst_13 = arith.constant dense<0.000000e+00> : vector<8x128xf32>
    %19 = tpu.matmul %17, %18, %cst_13 {dimension_numbers = #tpu.dot_dimension_numbers<[1], [0], [0], [1], [0, 0, 1, 1], [], []>} : vector<8x128xf32>, vector<128x128xf32>, vector<8x128xf32> -> vector<8x128xf32>
    %c0_14 = arith.constant 0 : index
    %c0_15 = arith.constant 0 : index
    %20 = vector.load %arg8[%c0_14, %c0_15] : memref<1x128xf32, #tpu.memory_space<vmem>>, vector<1x128xf32>
    %21 = vector.broadcast %20 : vector<1x128xf32> to vector<8x128xf32>
    %22 = arith.addf %19, %21 : vector<8x128xf32>
    %c0_16 = arith.constant 0 : index
    %c0_17 = arith.constant 0 : index
    %23 = vector.load %arg9[%c0_16, %c0_17] : memref<8x128xf32, #tpu.memory_space<vmem>>, vector<8x128xf32>
    tpu.vector_store %arg9[%c0_16, %c0_17], %22 {strides = array<i32>} : memref<8x128xf32, #tpu.memory_space<vmem>>, vector<8x128xf32>,
    return
  }
  func.func @transform_0(%arg0: i32, %arg1: i32) -> (i32, i32) {
    %c0_i32 = arith.constant 0 : i32
    %c0_i32_0 = arith.constant 0 : i32
    return %arg0, %c0_i32 : i32, i32
  }
  func.func @transform_1(%arg0: i32, %arg1: i32) -> (i32, i32) {
    %c0_i32 = arith.constant 0 : i32
    %c0_i32_0 = arith.constant 0 : i32
    return %c0_i32, %arg1 : i32, i32
  }
  func.func @transform_2(%arg0: i32, %arg1: i32) -> (i32, i32) {
    %c0_i32 = arith.constant 0 : i32
    %c0_i32_0 = arith.constant 0 : i32
    return %c0_i32, %arg1 : i32, i32
  }
  func.func @transform_3(%arg0: i32, %arg1: i32) -> (i32, i32) {
    %c0_i32 = arith.constant 0 : i32
    %c0_i32_0 = arith.constant 0 : i32
    return %c0_i32, %arg1 : i32, i32
  }
  func.func @transform_4(%arg0: i32, %arg1: i32) -> (i32, i32) {
    %c0_i32 = arith.constant 0 : i32
    %c0_i32_0 = arith.constant 0 : i32
    return %c0_i32, %arg1 : i32, i32
  }
  func.func @transform_5(%arg0: i32, %arg1: i32) -> (i32, i32) {
    %c0_i32 = arith.constant 0 : i32
    %c0_i32_0 = arith.constant 0 : i32
    return %arg1, %c0_i32 : i32, i32
  }
  func.func @transform_6(%arg0: i32, %arg1: i32) -> (i32, i32) {
    %c0_i32 = arith.constant 0 : i32
    %c0_i32_0 = arith.constant 0 : i32
    %c0_i32_1 = arith.constant 0 : i32
    return %c0_i32, %c0_i32_0 : i32, i32
  }
  func.func @transform_7(%arg0: i32, %arg1: i32) -> (i32, i32) {
    %c0_i32 = arith.constant 0 : i32
    %c0_i32_0 = arith.constant 0 : i32
    return %arg0, %c0_i32 : i32, i32
  }
}

</mosaic_0001>

<bundles_post_ra>
// kernel: tpu_custom_call.1
= control target key start
LH: loop header
LB: loop body
LE: loop exit
PB: predicated region body
PF: predicated region fallthrough
CT: control target
= control target key end

     0   :  { %s1269_s0 = inlined_call_operand.hbm [shape: f32[16,128], index: 0, kind: input, shape index: {}]   ;;  %s1270_s1 = inlined_call_operand.hbm [shape: f32[128,128], index: 1, kind: input, shape index: {}]   ;;  %s1271_s2 = inlined_call_operand.vmem [shape: f32[1,128], index: 2, kind: input, shape index: {}]   ;;  %s1272_s3 = inlined_call_operand.hbm [shape: f32[128,128], index: 3, kind: input, shape index: {}]   ;;  %s1273_s4 = inlined_call_operand.vmem [shape: f32[1,128], index: 4, kind: input, shape index: {}]   ;;  %s1274_s5 = inlined_call_operand.hbm [shape: f32[128,128], index: 5, kind: input, shape index: {}]   ;;  %s1275_s6 = inlined_call_operand.vmem [shape: f32[1,128], index: 6, kind: input, shape index: {}]   ;;  %s1276_s7 = inlined_call_operand.hbm [shape: f32[16,128], index: 7, kind: output, shape index: {}]  }
   0x1   :  { %1277 = sst [smem:[#allocation15_spill]] %s1270_s1 }
   0x2   :  { %1278 = sst [smem:[#allocation16_spill]] %s1272_s3 }
   0x3   :  { %12 = vsyncpa [#allocation3], 0 }
   0x4   :  { %14 = vsyncpa [#allocation3 + $0x1], 0 }
   0x5   :  { %15 = vsyncpa [#allocation6], 0 }
   0x6   :  { %16 = vsyncpa [#allocation9], 0 }
   0x7   :  { %17 = vsyncpa [#allocation4], 0 }
   0x8   :  { %19 = vsyncpa [#allocation4 + $0x1], 0  ;;  %s1086_s24 = smov 0   ;;  %s1088_s25 = smov 0  }
   0x9   :  { %s1090_s26 = smov 0   ;;  %s1092_s27 = smov 0  }
   0xa   :  { %s1094_s28 = smov 0   ;;  %s1096_s29 = smov 0  }
   0xb LB: > { %s705_s30 = sadd.s32 4294967295, %s1039_s29   ;;  %p707_p0 = scmp.ge.s32.totalorder %s1039_s29, 1  ;;  %s1039_s29 = sphi %s1096_s29, %s25_s29   ;;  %s1035_s28 = sphi %s1094_s28, %s1292_s28   ;;  %s1031_s27 = sphi %s1092_s27, %s1291_s27   ;;  %s1027_s26 = sphi %s1090_s26, %s1290_s26   ;;  %s1023_s25 = sphi %s1088_s25, %s1289_s25   ;;  %s1019_s24 = sphi %s1086_s24, %s1288_s24  }
   0xc   : > { %p1120_p1 = scmp.eq.s32.totalorder %s705_s30, 0  ;;  %p245_p2 = scmp.lt.s32.totalorder %s1039_s29, 3 }
   0xd   : > { %s1280_s1 = sld [smem:[#allocation15_spill]]  ;;  %s1041_s13 = smov [#allocation5]  }
   0xe   : > { %p1128_p3 = pnand %p707_p0, %p245_p2  ;;  %s260_s14 = sshll.u32 %s1041_s13, 4  ;;  %s261_s14 = int_to_ptr.vmem [resolvable:$true] %s260_s14 }
   0xf   : > { %p713_p6 = scmp.ge.s32.totalorder %s1039_s29, 2  ;;  %s1283_s3 = sld [smem:[#allocation16_spill]] }
  0x10   : > { %p743_p4 = pneg %p1128_p3  ;;  %s1042_s19 = smov 128  }
  0x11   : > { %s1043_s20 = smov 8   ;;  %s1044_s21 = smov [#allocation7]  }
  0x12   : > { %p1136_p5 = pnand %p743_p4, %p1120_p1  ;;  %s282_s22 = sshll.u32 %s1044_s21, 4  ;;  %s283_s22 = int_to_ptr.vmem [resolvable:$true] %s282_s22 }
  0x13   : > { %s258_s11 = sshll.u32 %s1280_s1, 4  ;;  %s303_s10 = sshll.u32 %s1274_s5, 4  ;;  %s259_s11 = int_to_ptr.hbm [resolvable:$true] %s258_s11  ;;  %s304_s10 = int_to_ptr.hbm [resolvable:$true] %s303_s10 }
  0x14   : > { %746 = dma.hbm_to_vmem [thread:$0]  (!%p1136_p5), %s259_s11, 2048, %s261_s14, [#allocation6], %s1042_s19, %s1042_s19, %s1043_s20  }
  0x15   : > { %s280_s18 = sshll.u32 %s1283_s3, 4  ;;  %s1045_s13 = smov [#allocation8]   ;;  %s281_s18 = int_to_ptr.hbm [resolvable:$true] %s280_s18 }
  0x16   : > { %749 = dma.hbm_to_vmem [thread:$0]  (!%p1136_p5), %s281_s18, 2048, %s283_s22, [#allocation6], %s1042_s19, %s1042_s19, %s1043_s20  }
  0x17   : > { %s305_s16 = sshll.u32 %s1045_s13, 4  ;;  %s706_s11 = sadd.s32 4294967294, %s1039_s29   ;;  %s306_s16 = int_to_ptr.vmem [resolvable:$true] %s305_s16 }
  0x18   : > { %752 = dma.hbm_to_vmem [thread:$0]  (!%p1136_p5), %s304_s10, 2048, %s306_s16, [#allocation9], %s1042_s19, %s1042_s19, %s1043_s20  }
  0x19   : > { %s37_s14 = sadd.s32 1, %s1035_s28  ;;  %s44_s17 = sadd.s32 1, %s1027_s26 }
  0x1a   : > { %p39_p7 = scmp.ge.s32.totalorder %s37_s14, 2  ;;  %p51_p8 = scmp.ne.s32.totalorder %s1027_s26, %s1023_s25 }
  0x1b   : > { %p52_p9 = scmp.eq.s32.totalorder %s1039_s29, 0  ;;  %p57_p10 = scmp.ne.s32.totalorder %s1023_s25, %s1019_s24 }
  0x1c   : > { %s1294_s14 = smov (%p39_p7, %s37_s14), 0  ;;  %p232_p13 = scmp.eq.s32.totalorder %s705_s30, 1 }
  0x1d   : > { %p1163_p11 = por %p52_p9, %p51_p8  ;;  %p1169_p12 = por %p1120_p1, %p57_p10 }
  0x1e   : > { %s41_s19 = ssub.s32 %s1035_s28, %s1294_s14  ;;  %p238_p2 = scmp.eq.s32.totalorder %s706_s11, 1 }
  0x1f   : > { %p42_p0 = scmp.eq.s32.totalorder %s41_s19, 0  ;;  %p1177_p4 = por %p232_p13, %p51_p8 }
  0x20   : > { %p764_p5 = scmp.lt.s32.totalorder %s1039_s29, 2  ;;  %p1185_p7 = por %p238_p2, %p57_p10 }
  0x21   : > { %s1183_s21 = scalar_select %p42_p0, %s1027_s26, %s44_s17  }
  0x22   : > { %s322_s23 = sand.u32 1, %s1027_s26   ;;  %s715_s10 = sshll.u32 %s1035_s28, 3 }
  0x23   : > { %s714_s9 = sshll.u32 %s322_s23, 3  ;;  %s330_s30 = scalar_lea.hbm %s1269_s0, %s715_s10 }
  0x24   : > { %s326_s19 = scalar_lea.vmem [#allocation2], %s714_s9  ;;  %s332_s1 = sshll.u32 %s330_s30, 4  ;;  %s333_s1 = int_to_ptr.hbm [resolvable:$true] %s332_s1 }
  0x25   : > { %s334_s11 = sshll.u32 %s326_s19, 4  ;;  %p754_p8 = pnand %p764_p5, %p1163_p11  ;;  %s335_s11 = int_to_ptr.vmem [resolvable:$true] %s334_s11 }
  0x26   : > { %s323_s17 = scalar_lea.sflag [#allocation3], %s322_s23  ;;  %343 = sbr.rel (%p1128_p3) target bundleno = 377 (0x179), region = 48 }
  0x27   : > { %756 = dma.hbm_to_vmem [thread:$0]  (!%p754_p8), %s333_s1, 128, %s335_s11, %s323_s17  }
  0x28   : > { %s1199_s3 = sand.u32 (!%p1128_p3), 1, %s1023_s25  }
  0x29   : > { %s717_s10 = sshll.u32 (!%p1128_p3), %s1199_s3, 3  ;;  %s346_s9 = scalar_lea.sflag (!%p1128_p3), [#allocation3], %s1199_s3 }
  0x2a   : > { %s1205_s13 = scalar_lea.vmem (!%p1128_p3), [#allocation2], %s717_s10 }
  0x2b   : > { %1002 = dma.done.wait (%p1169_p12), %s346_s9, 128  }
  0x2c   : > { %1004 = vsyncadd (%p1169_p12), %s346_s9, 4294967168 }
  0x2d   : > { %1006 = dma.done.wait (%p1120_p1), [#allocation6], 4096  }
  0x2e   : > { %1008 = vsyncadd (%p1120_p1), [#allocation6], 4294963200 }
  0x2f   : > { %1010 = dma.done.wait (%p1120_p1), [#allocation9], 2048  }
  0x30   : > { %1012 = vsyncadd (%p1120_p1), [#allocation9], 4294965248  ;;  %v465_v0 = vld [vmem:[#allocation7 + $0x78] sm:$0xff]  ;;  %v464_v1 = vld [vmem:[#allocation7 + $0x70] sm:$0xff]  ;;  %s724_s15 = sshll.u32 %s1031_s27, 3  ;;  %s401_s17 = scalar_lea.vmem [#allocation10], %s717_s10 }
  0x31   : > { %470 = vmatpush.msra.mxu1 %v465_v0  ;;  %v463_v2 = vld [vmem:[#allocation7 + $0x68] sm:$0xff]  ;;  %v462_v3 = vld [vmem:[#allocation7 + $0x60] sm:$0xff]  ;;  %v425_v4 = vld [vmem:[#allocation5 + $0x78] sm:$0xff]  ;;  %s563_s30 = scalar_lea.hbm %s1276_s7, %s724_s15  ;;  %s565_s9 = sshll.u32 %s401_s17, 4  ;;  %s566_s9 = int_to_ptr.vmem [resolvable:$true] %s565_s9 }
  0x32   : > { %v461_v5 = vld [vmem:[#allocation7 + $0x58] sm:$0xff]  ;;  %430 = vmatpush.msra.mxu0 %v425_v4  ;;  %v424_v6 = vld [vmem:[#allocation5 + $0x70] sm:$0xff]  ;;  %v423_v7 = vld [vmem:[#allocation5 + $0x68] sm:$0xff]  ;;  %s553_s1 = scalar_lea.sflag [#allocation4], %s1199_s3  ;;  %s969_s15 = scalar_lea.hbm %s1276_s7, 16 }
  0x33   : > { %471 = vmatpush.msra.mxu1 %v464_v1  ;;  %v460_v8 = vld [vmem:[#allocation7 + $0x50] sm:$0xff]  ;;  %v422_v9 = vld [vmem:[#allocation5 + $0x60] sm:$0xff]  ;;  %v459_v10 = vld [vmem:[#allocation7 + $0x48] sm:$0xff] }
  0x34   : > { %431 = vmatpush.msra.mxu0 %v424_v6  ;;  %v421_v11 = vld [vmem:[#allocation5 + $0x58] sm:$0xff]  ;;  %v458_v12 = vld [vmem:[#allocation7 + $0x40] sm:$0xff]  ;;  %v420_v13 = vld [vmem:[#allocation5 + $0x50] sm:$0xff] }
  0x35   : > { %472 = vmatpush.msra.mxu1 %v463_v2  ;;  %v457_v14 = vld [vmem:[#allocation7 + $0x38] sm:$0xff]  ;;  %v419_v15 = vld [vmem:[#allocation5 + $0x48] sm:$0xff]  ;;  %v456_v16 = vld [vmem:[#allocation7 + $0x30] sm:$0xff] }
  0x36   : > { %432 = vmatpush.msra.mxu0 %v423_v7  ;;  %v418_v17 = vld [vmem:[#allocation5 + $0x40] sm:$0xff]  ;;  %v455_v18 = vld [vmem:[#allocation7 + $0x28] sm:$0xff]  ;;  %v417_v19 = vld [vmem:[#allocation5 + $0x38] sm:$0xff] }
  0x37   : > { %473 = vmatpush.msra.mxu1 %v462_v3  ;;  %v454_v20 = vld [vmem:[#allocation7 + $0x20] sm:$0xff]  ;;  %v416_v21 = vld [vmem:[#allocation5 + $0x30] sm:$0xff]  ;;  %v453_v22 = vld [vmem:[#allocation7 + $0x18] sm:$0xff] }
  0x38   : > { %433 = vmatpush.msra.mxu0 %v422_v9  ;;  %v415_v23 = vld [vmem:[#allocation5 + $0x28] sm:$0xff]  ;;  %v452_v24 = vld [vmem:[#allocation7 + $0x10] sm:$0xff]  ;;  %v414_v25 = vld [vmem:[#allocation5 + $0x20] sm:$0xff] }
  0x39   : > { %474 = vmatpush.msra.mxu1 %v461_v5  ;;  %v451_v26 = vld [vmem:[#allocation7 + $0x8] sm:$0xff]  ;;  %v413_v27 = vld [vmem:[#allocation5 + $0x18] sm:$0xff]  ;;  %v450_v28 = vld [vmem:[#allocation7] sm:$0xff] }
  0x3a   : > { %434 = vmatpush.msra.mxu0 %v421_v11  ;;  %v409_v29 = vld [vmem:[%s1205_s13] sm:$0xff]  ;;  %v411_v31 = vld [vmem:[#allocation5 + $0x8] sm:$0xff]  ;;  %v410_v32 = vld [vmem:[#allocation5] sm:$0xff]  ;;  %s567_s13 = sshll.u32 %s563_s30, 4  ;;  %s568_s13 = int_to_ptr.hbm [resolvable:$true] %s567_s13 }
  0x3b   : > { %475 = vmatpush.msra.mxu1 %v460_v8  ;;  %v412_v30 = vld [vmem:[#allocation5 + $0x10] sm:$0xff]  ;;  %v526_v33 = vld [vmem:[#allocation8 + $0x78] sm:$0xff]  ;;  %v524_v35 = vld [vmem:[#allocation8 + $0x68] sm:$0xff]  ;;  %s963_s27 = sshra.s32 %s568_s13, 4  ;;  %s964_s27 = int_to_ptr.hbm [resolvable:$true] %s963_s27 }
  0x3c   : > { %435 = vmatpush.msra.mxu0 %v420_v13  ;;  %531 = vmatpush.msra.mxu2 %v526_v33  ;;  %v525_v34 = vld [vmem:[#allocation8 + $0x70] sm:$0xff]  ;;  %v523_v36 = vld [vmem:[#allocation8 + $0x60] sm:$0xff]  ;;  %v522_v37 = vld [vmem:[#allocation8 + $0x58] sm:$0xff]  ;;  %s965_s8 = scalar_lea.hbm %s964_s27, 8  ;;  %p970_p10 = scmp.lt.s32.totalorder %s964_s27, %s1276_s7 }
  0x3d   : > { %476 = vmatpush.msra.mxu1 %v459_v10  ;;  %v521_v38 = vld [vmem:[#allocation8 + $0x50] sm:$0xff]  ;;  %v520_v39 = vld [vmem:[#allocation8 + $0x48] sm:$0xff]  ;;  %v519_v40 = vld [vmem:[#allocation8 + $0x40] sm:$0xff]  ;;  %p966_p1 = scmp.ne.s32.totalorder %s964_s27, %s965_s8  ;;  %p971_p11 = scmp.lt.s32.totalorder %s969_s15, %s965_s8 }
  0x3e   : > { %436 = vmatpush.msra.mxu0 %v419_v15  ;;  %532 = vmatpush.msra.mxu2 %v525_v34  ;;  %v518_v41 = vld [vmem:[#allocation8 + $0x38] sm:$0xff]  ;;  %v517_v42 = vld [vmem:[#allocation8 + $0x30] sm:$0xff]  ;;  %v516_v43 = vld [vmem:[#allocation8 + $0x28] sm:$0xff] }
  0x3f   : > { %477 = vmatpush.msra.mxu1 %v458_v12  ;;  %v515_v44 = vld [vmem:[#allocation8 + $0x20] sm:$0xff]  ;;  %v514_v45 = vld [vmem:[#allocation8 + $0x18] sm:$0xff]  ;;  %v822_v46 = vld [vmem:[%s1273_s4] ss:$0 sm:$0xff]  ;;  %p967_p3 = pnand %p966_p1, %p1177_p4  ;;  %p972_p12 = por %p971_p11, %p970_p10 }
  0x40   : > { %437 = vmatpush.msra.mxu0 %v418_v17  ;;  %533 = vmatpush.msra.mxu2 %v524_v35  ;;  %v513_v47 = vld [vmem:[#allocation8 + $0x10] sm:$0xff]  ;;  %v512_v48 = vld [vmem:[#allocation8 + $0x8] sm:$0xff]  ;;  %v511_v49 = vld [vmem:[#allocation8] sm:$0xff] }
  0x41   : > { %478 = vmatpush.msra.mxu1 %v457_v14  ;;  %v823_v61 = vld [vmem:[%s1271_s2] ss:$0 sm:$0xff]  ;;  %p968_p9 = pneg %p967_p3 }
  0x42   : > { %438 = vmatpush.msra.mxu0 %v417_v19  ;;  %534 = vmatpush.msra.mxu2 %v523_v36  ;;  %v824_v6 = vld [vmem:[%s1275_s6] ss:$0 sm:$0xff] }
  0x43   : > { %479 = vmatpush.msra.mxu1 %v456_v16  ;;  %p973_p13 = pnand %p972_p12, %p968_p9 }
  0x44   : > { %439 = vmatpush.msra.mxu0 %v416_v21  ;;  %535 = vmatpush.msra.mxu2 %v522_v37 }
  0x45   : > { %480 = vmatpush.msra.mxu1 %v455_v18 }
  0x46   : > { %440 = vmatpush.msra.mxu0 %v415_v23  ;;  %536 = vmatpush.msra.mxu2 %v521_v38 }
  0x47   : > { %481 = vmatpush.msra.mxu1 %v454_v20 }
  0x48   : > { %441 = vmatpush.msra.mxu0 %v414_v25  ;;  %537 = vmatpush.msra.mxu2 %v520_v39 }
  0x49   : > { %482 = vmatpush.msra.mxu1 %v453_v22 }
  0x4a   : > { %442 = vmatpush.msra.mxu0 %v413_v27  ;;  %538 = vmatpush.msra.mxu2 %v519_v40 }
  0x4b   : > { %483 = vmatpush.msra.mxu1 %v452_v24 }
  0x4c   : > { %443 = vmatpush.msra.mxu0 %v412_v30  ;;  %539 = vmatpush.msra.mxu2 %v518_v41 }
  0x4d   : > { %484 = vmatpush.msra.mxu1 %v451_v26 }
  0x4e   : > { %444 = vmatpush.msra.mxu0 %v411_v31  ;;  %540 = vmatpush.msra.mxu2 %v517_v42 }
  0x4f   : > { %485 = vmatpush.msra.mxu1 %v450_v28 }
  0x50   : > { %486 = vmatmul.f32.vlgmr.msra.gmra.mxu1 %v409_v29  ;;  %445 = vmatpush.msra.mxu0 %v410_v32 }
  0x51   : > { %446 = vmatmul.f32.vlgmr.msra.gmra.mxu0 %v409_v29  ;;  %541 = vmatpush.msra.mxu2 %v516_v43 }
  0x53   : > { %542 = vmatpush.msra.mxu2 %v515_v44 }
  0x55   : > { %543 = vmatpush.msra.mxu2 %v514_v45 }
  0x57   : > { %544 = vmatpush.msra.mxu2 %v513_v47 }
  0x59   : > { %545 = vmatpush.msra.mxu2 %v512_v48 }
  0x5b   : > { %546 = vmatpush.msra.mxu2 %v511_v49 }
  0xcd   : > { %v487_v50 = vpop.f32.mrf.mxu1 }
  0xce   : > { %v488_v51 = vadd.f32 %v822_v46, %v487_v50  ;;  %v447_v62 = vpop.f32.mrf.mxu0 }
  0xcf   : > { %v448_v2 = vadd.f32 %v823_v61, %v447_v62 }
  0xd0   : > { %v722_v52 = vmul.f32 -1.442695, %v488_v51 }
  0xd2   : > { %825 = vpow2.f32 %v722_v52 }
  0xd8   : > { %v826_v53 = vpop.eup %825 }
  0xd9   : > { %v493_v54 = vadd.f32 1.0, %v826_v53 }
  0xdb   : > { %827 = vrcp.f32 %v493_v54  ;;  %v505_v58 = vand.u32 2147483648, %v493_v54  ;;  %v503_v60 = vand.u32 2147483647, %v493_v54  ;;  %vm499_vm1 = vweird.f32 %v493_v54 }
  0xdd   : > { %v506_v0 = vor.u32 1.1754944e-38, %v505_v58  ;;  %vm504_vm3 = vcmp.eq.f32.partialorder %v503_v60, 8.507059e+37 }
  0xe1   : > { %v828_v55 = vpop.eup %827 }
  0xe2   : > { %v495_v56 = vmul.f32 %v828_v55, %v493_v54  ;;  %vm500_vm0 = vweird.f32 %v828_v55 }
  0xe3   : > { %vm501_vm2 = vmor %vm499_vm1, %vm500_vm0 }
  0xe4   : > { %v496_v57 = vsub.f32 1.0, %v495_v56 }
  0xe6   : > { %v497_v59 = vmul.f32 %v828_v55, %v496_v57 }
  0xe8   : > { %v498_v63 = vadd.f32 %v828_v55, %v497_v59 }
  0xea   : > { %v502_v1 = vsel %vm501_vm2, %v828_v55, %v498_v63 }
  0xeb   : > { %v507_v3 = vsel %vm504_vm3, %v506_v0, %v502_v1 }
  0xec   : > { %v509_v4 = vmul.f32 %v507_v3, %v488_v51 }
  0xee   : > { %v510_v5 = vmul.f32 %v509_v4, %v448_v2 }
  0xf0   : > { %547 = vmatmul.f32.vlgmr.msra.gmra.mxu2 %v510_v5 }
 0x173   : > { %v548_v7 = vpop.f32.mrf.mxu2 }
 0x174   : > { %v549_v8 = vadd.f32 %v824_v6, %v548_v7 }
 0x176   : > { %551 = vst [vmem:[%s401_s17] sm:$0xff] %v549_v8 }
 0x177   : > { %976 = shalt.err (!%p973_p13)
}
 0x178   : > { %741 = dma.vmem_to_hbm [thread:$0]  (%p1177_p4), %s566_s9, 128, %s568_s13, %s553_s1  }
 0x179 PF: > { %s579_s3 = sand.u32 1, %s1019_s24   ;;  %p758_p0 = pnand %p713_p6, %p1185_p7 }
 0x17a   : > { %s580_s16 = scalar_lea.sflag [#allocation4], %s579_s3 }
 0x17b   : > { %p759_p2 = pneg %p758_p0 }
 0x17d   : > { %1014 = dma.done.wait (%p759_p2), %s580_s16, 128  }
 0x17e   : > { %1016 = vsyncadd (%p759_p2), %s580_s16, 4294967168  ;;  %s25_s29 = sadd.s32 1, %s1039_s29   ;;  %s1288_s24 = smov %s1023_s25 }
 0x17f   : > { %p22_p5 = scmp.ge.s32.totalorder %s25_s29, 4   ;;  %s1289_s25 = smov %s1027_s26 }
 0x180   : > { %s1290_s26 = smov %s1183_s21  ;;  %s1291_s27 = smov %s1035_s28 }
 0x181   : > { %s1292_s28 = smov %s1294_s14  ;;  %24 = sbr.rel (!%p22_p5) target bundleno = 11 (0xb), region = 114 }
 0x186   :  { %586 = vsyncpa [#allocation3], 1 }
 0x187   :  { %588 = vsyncpa [#allocation3 + $0x1], 1 }
 0x188   :  { %589 = vsyncpa [#allocation6], 1 }
 0x189   :  { %590 = vsyncpa [#allocation9], 1 }
 0x18a   :  { %591 = vsyncpa [#allocation4], 1 }
 0x18b   :  { %593 = vsyncpa [#allocation4 + $0x1], 1 }

</bundles_post_ra>
